<compile_context>
chip_gen: v7x
topology: tpu7x:2x2x1
jax: 0.10.0
libtpu: 0.0.40
codegen_flags: <defaults>
</compile_context>

<pallas_src>
import functools

import jax
import jax.numpy as jnp
from jax.experimental import pallas as pl
from jax.experimental.pallas import tpu as pltpu


def _round_up(x, m):
    return (x + m - 1) // m * m


def _conv_shift_matmul_kernel(w_ref, x_ref, o_ref, *, K, Wp, L_pad):
    """One batch: out = sum_{kh,kw} W_khkw @ shift(x_flat, kh*Wp + kw).

    w_ref: (K*K, O_pad, C_pad)  compute dtype (bf16)   per-tap weight matrices
    x_ref: (C_pad, X_LEN)       compute dtype (bf16)   flat padded image slab
    o_ref: (O_pad, L_pad)       float32                wide (width=Wp) output
    """
    acc = jnp.zeros(o_ref.shape, jnp.float32)
    for kh in range(K):                      # K*K statically unrolled taps
        for kw in range(K):
            off = kh * Wp + kw               # static lane offset (in-VMEM shift)
            xs = x_ref[:, off:off + L_pad]   # (C_pad, L_pad) shifted view
            wk = w_ref[kh * K + kw]          # (O_pad, C_pad)
            acc = acc + jnp.dot(wk, xs, preferred_element_type=jnp.float32)
    o_ref[...] = acc                         # single lane-dense f32 store


def conv_without_bias_forward(x, weight, bias=None, *, stride=1, padding=0,
                              compute_dtype=jnp.bfloat16):
    """x: (N, C, H, W) f32; weight: (O, C, K, K) f32; bias (module keeps it zero)."""
    N, C, H, W = x.shape
    O, C_w, K, K2 = weight.shape
    assert C == C_w and K == K2

    h_out = (H + 2 * padding - (K - 1) - 1) // stride + 1
    w_out = (W + 2 * padding - (K - 1) - 1) // stride + 1

    Hp, Wp = H + 2 * padding, W + 2 * padding
    Ho1 = Hp - K + 1                  # stride-1 output height
    Wo1 = Wp - K + 1                  # stride-1 output width
    L_wide = Ho1 * Wp                 # wide flattened output length (width=Wp)
    L_pad = _round_up(L_wide, 128)    # lane-dense (128-multiple) output
    max_off = (K - 1) * Wp + (K - 1)  # largest in-kernel shift
    X_LEN = _round_up(max(Hp * Wp, max_off + L_pad), 128)

    C_pad = _round_up(C, 8)
    O_pad = _round_up(O, 8)

    # ---- cheap layout prep in plain JAX (no K^2 duplication, ~1x HBM traffic) --
    x_p = jnp.pad(x, ((0, 0), (0, C_pad - C),
                      (padding, padding), (padding, padding)))
    x_flat = x_p.reshape(N, C_pad, Hp * Wp)
    x_flat = jnp.pad(x_flat, ((0, 0), (0, 0), (0, X_LEN - Hp * Wp)))
    x_flat = x_flat.astype(compute_dtype)

    w_p = jnp.pad(weight, ((0, O_pad - O), (0, C_pad - C), (0, 0), (0, 0)))
    w_kk = jnp.transpose(w_p, (2, 3, 0, 1)).reshape(K * K, O_pad, C_pad)
    w_kk = w_kk.astype(compute_dtype)

    kernel = functools.partial(_conv_shift_matmul_kernel, K=K, Wp=Wp, L_pad=L_pad)

    bytes_accessed = (x_flat.size * x_flat.dtype.itemsize
                      + w_kk.size * w_kk.dtype.itemsize
                      + N * O_pad * L_pad * 4)

    out_wide = pl.pallas_call(
        kernel,
        out_shape=jax.ShapeDtypeStruct((N, O_pad, L_pad), jnp.float32),
        grid_spec=pltpu.PrefetchScalarGridSpec(
            num_scalar_prefetch=0,
            grid=(N,),
            in_specs=[
                pl.BlockSpec((K * K, O_pad, C_pad), lambda b: (0, 0, 0)),  # weights
                pl.BlockSpec((None, C_pad, X_LEN), lambda b: (b, 0, 0)),   # x slab
            ],
            out_specs=pl.BlockSpec((None, O_pad, L_pad), lambda b: (b, 0, 0)),
        ),
        compiler_params=pltpu.CompilerParams(
            dimension_semantics=("parallel",),        # batch shards across TCs (v7x)
            vmem_limit_bytes=32 * 1024 * 1024),
        cost_estimate=pl.CostEstimate(
            flops=2 * N * O * C * K * K * h_out * w_out,
            transcendentals=0,
            bytes_accessed=bytes_accessed),
    )(w_kk, x_flat)

    # TODO(synk): for realistic conv sizes (e.g. C=256, 56x56 maps) add spatial /
    # channel tiling with a halo'd x block (manual DMA) and a reduction grid axis
    # with a VMEM scratch accumulator; the single-slab-per-batch layout here is
    # sized for small images and fits VMEM comfortably on v5e/v6e/v7x.

    # Drop O / lane padding, recover 2-D spatial, slice off the invalid "wide"
    # columns, then apply stride by subsampling (matches the module's formula).
    out = out_wide[:, :O, :L_wide].reshape(N, O, Ho1, Wp)[:, :, :, :Wo1]
    out = out[:, :, ::stride, ::stride]

    if bias is not None:      # module's bias is fixed at zero -> kept out of kernel
        out = out + bias.reshape(1, O, 1, 1).astype(out.dtype)
    return out


if __name__ == "__main__":
    # Small shapes consistent with the module: NCHW input, square kernel.
    N, C, H, W = 2, 4, 16, 16
    O, K = 8, 3
    stride, padding = 1, 0

    key = jax.random.PRNGKey(0)
    kx, kw = jax.random.split(key)
    x = jax.random.normal(kx, (N, C, H, W), dtype=jnp.float32)
    weight = jax.random.normal(kw, (O, C, K, K), dtype=jnp.float32)

    # bias stays zero in the module -> omitted from the hot path.
    out = conv_without_bias_forward(x, weight, None, stride=stride, padding=padding)
    out = jax.block_until_ready(out)

    h_out = (H + 2 * padding - (K - 1) - 1) // stride + 1
    w_out = (W + 2 * padding - (K - 1) - 1) // stride + 1
    assert out.shape == (N, O, h_out, w_out)

    # Primary check: same bf16 operands, f32 accumulation, via XLA conv.
    ref_bf16 = jax.lax.conv_general_dilated(
        x.astype(jnp.bfloat16), weight.astype(jnp.bfloat16),
        window_strides=(stride, stride),
        padding=((padding, padding), (padding, padding)),
        dimension_numbers=("NCHW", "OIHW", "NCHW"),
        preferred_element_type=jnp.float32)
    assert jnp.allclose(out, ref_bf16, atol=2e-2, rtol=2e-2), "mismatch vs bf16 ref"

    # Sanity check vs full-f32 conv (bounds bf16 operand drift).
    ref_f32 = jax.lax.conv_general_dilated(
        x, weight, window_strides=(stride, stride),
        padding=((padding, padding), (padding, padding)),
        dimension_numbers=("NCHW", "OIHW", "NCHW"))
    assert jnp.allclose(out, ref_f32, atol=2.5e-1, rtol=5e-2), "bf16 drift too large"

    print("KERNEL_OK")
</pallas_src>

<mosaic_0001>
module attributes {stable_mosaic.version = 11 : i64} {
  func.func @_conv_shift_matmul_kernel(%arg0: i32, %arg1: memref<9x8x8xbf16, #tpu.memory_space<vmem>>, %arg2: memref<1x8x384xbf16, #tpu.memory_space<vmem>>, %arg3: memref<1x8x256xf32, #tpu.memory_space<vmem>>) attributes {dimension_semantics = [#tpu.dimension_semantics<parallel>], iteration_bounds = array<i64: 2>, scalar_prefetch = 0 : i64, scratch_operands = 0 : i64, tpu.core_type = #tpu.core_type<tc>, window_params = [{pipeline_mode = #tpu.pipeline_mode<synchronous>, transform_indices = @transform_0, window_bounds = array<i64: 9, 8, 8>}, {transform_indices = @transform_1, window_bounds = array<i64: 1, 8, 384>}, {transform_indices = @transform_2, window_bounds = array<i64: 1, 8, 256>}]} {
    %cst = arith.constant 0.000000e+00 : f32
    %0 = vector.broadcast %cst : f32 to vector<8x256xf32>
    %c0 = arith.constant 0 : index
    %c0_0 = arith.constant 0 : index
    %c0_1 = arith.constant 0 : index
    %1 = vector.load %arg2[%c0, %c0_0, %c0_1] : memref<1x8x384xbf16, #tpu.memory_space<vmem>>, vector<1x8x256xbf16>
    %2 = vector.shape_cast %1 : vector<1x8x256xbf16> to vector<8x256xbf16>
    %c0_2 = arith.constant 0 : index
    %c0_3 = arith.constant 0 : index
    %c0_4 = arith.constant 0 : index
    %3 = vector.load %arg1[%c0_2, %c0_3, %c0_4] : memref<9x8x8xbf16, #tpu.memory_space<vmem>>, vector<1x8x8xbf16>
    %4 = vector.shape_cast %3 : vector<1x8x8xbf16> to vector<8x8xbf16>
    %cst_5 = arith.constant dense<0.000000e+00> : vector<8x256xf32>
    %5 = tpu.matmul %4, %2, %cst_5 {dimension_numbers = #tpu.dot_dimension_numbers<[1], [0], [0], [1], [0, 0, 1, 1], [], []>} : vector<8x8xbf16>, vector<8x256xbf16>, vector<8x256xf32> -> vector<8x256xf32>
    %6 = arith.addf %0, %5 : vector<8x256xf32>
    %c0_6 = arith.constant 0 : index
    %c0_7 = arith.constant 0 : index
    %c1 = arith.constant 1 : index
    %7 = vector.load %arg2[%c0_6, %c0_7, %c1] : memref<1x8x384xbf16, #tpu.memory_space<vmem>>, vector<1x8x256xbf16>
    %8 = vector.shape_cast %7 : vector<1x8x256xbf16> to vector<8x256xbf16>
    %c1_8 = arith.constant 1 : index
    %c0_9 = arith.constant 0 : index
    %c0_10 = arith.constant 0 : index
    %9 = vector.load %arg1[%c1_8, %c0_9, %c0_10] : memref<9x8x8xbf16, #tpu.memory_space<vmem>>, vector<1x8x8xbf16>
    %10 = vector.shape_cast %9 : vector<1x8x8xbf16> to vector<8x8xbf16>
    %cst_11 = arith.constant dense<0.000000e+00> : vector<8x256xf32>
    %11 = tpu.matmul %10, %8, %cst_11 {dimension_numbers = #tpu.dot_dimension_numbers<[1], [0], [0], [1], [0, 0, 1, 1], [], []>} : vector<8x8xbf16>, vector<8x256xbf16>, vector<8x256xf32> -> vector<8x256xf32>
    %12 = arith.addf %6, %11 : vector<8x256xf32>
    %c0_12 = arith.constant 0 : index
    %c0_13 = arith.constant 0 : index
    %c2 = arith.constant 2 : index
    %13 = vector.load %arg2[%c0_12, %c0_13, %c2] : memref<1x8x384xbf16, #tpu.memory_space<vmem>>, vector<1x8x256xbf16>
    %14 = vector.shape_cast %13 : vector<1x8x256xbf16> to vector<8x256xbf16>
    %c2_14 = arith.constant 2 : index
    %c0_15 = arith.constant 0 : index
    %c0_16 = arith.constant 0 : index
    %15 = vector.load %arg1[%c2_14, %c0_15, %c0_16] : memref<9x8x8xbf16, #tpu.memory_space<vmem>>, vector<1x8x8xbf16>
    %16 = vector.shape_cast %15 : vector<1x8x8xbf16> to vector<8x8xbf16>
    %cst_17 = arith.constant dense<0.000000e+00> : vector<8x256xf32>
    %17 = tpu.matmul %16, %14, %cst_17 {dimension_numbers = #tpu.dot_dimension_numbers<[1], [0], [0], [1], [0, 0, 1, 1], [], []>} : vector<8x8xbf16>, vector<8x256xbf16>, vector<8x256xf32> -> vector<8x256xf32>
    %18 = arith.addf %12, %17 : vector<8x256xf32>
    %c0_18 = arith.constant 0 : index
    %c0_19 = arith.constant 0 : index
    %c16 = arith.constant 16 : index
    %19 = vector.load %arg2[%c0_18, %c0_19, %c16] : memref<1x8x384xbf16, #tpu.memory_space<vmem>>, vector<1x8x256xbf16>
    %20 = vector.shape_cast %19 : vector<1x8x256xbf16> to vector<8x256xbf16>
    %c3 = arith.constant 3 : index
    %c0_20 = arith.constant 0 : index
    %c0_21 = arith.constant 0 : index
    %21 = vector.load %arg1[%c3, %c0_20, %c0_21] : memref<9x8x8xbf16, #tpu.memory_space<vmem>>, vector<1x8x8xbf16>
    %22 = vector.shape_cast %21 : vector<1x8x8xbf16> to vector<8x8xbf16>
    %cst_22 = arith.constant dense<0.000000e+00> : vector<8x256xf32>
    %23 = tpu.matmul %22, %20, %cst_22 {dimension_numbers = #tpu.dot_dimension_numbers<[1], [0], [0], [1], [0, 0, 1, 1], [], []>} : vector<8x8xbf16>, vector<8x256xbf16>, vector<8x256xf32> -> vector<8x256xf32>
    %24 = arith.addf %18, %23 : vector<8x256xf32>
    %c0_23 = arith.constant 0 : index
    %c0_24 = arith.constant 0 : index
    %c17 = arith.constant 17 : index
    %25 = vector.load %arg2[%c0_23, %c0_24, %c17] : memref<1x8x384xbf16, #tpu.memory_space<vmem>>, vector<1x8x256xbf16>
    %26 = vector.shape_cast %25 : vector<1x8x256xbf16> to vector<8x256xbf16>
    %c4 = arith.constant 4 : index
    %c0_25 = arith.constant 0 : index
    %c0_26 = arith.constant 0 : index
    %27 = vector.load %arg1[%c4, %c0_25, %c0_26] : memref<9x8x8xbf16, #tpu.memory_space<vmem>>, vector<1x8x8xbf16>
    %28 = vector.shape_cast %27 : vector<1x8x8xbf16> to vector<8x8xbf16>
    %cst_27 = arith.constant dense<0.000000e+00> : vector<8x256xf32>
    %29 = tpu.matmul %28, %26, %cst_27 {dimension_numbers = #tpu.dot_dimension_numbers<[1], [0], [0], [1], [0, 0, 1, 1], [], []>} : vector<8x8xbf16>, vector<8x256xbf16>, vector<8x256xf32> -> vector<8x256xf32>
    %30 = arith.addf %24, %29 : vector<8x256xf32>
    %c0_28 = arith.constant 0 : index
    %c0_29 = arith.constant 0 : index
    %c18 = arith.constant 18 : index
    %31 = vector.load %arg2[%c0_28, %c0_29, %c18] : memref<1x8x384xbf16, #tpu.memory_space<vmem>>, vector<1x8x256xbf16>
    %32 = vector.shape_cast %31 : vector<1x8x256xbf16> to vector<8x256xbf16>
    %c5 = arith.constant 5 : index
    %c0_30 = arith.constant 0 : index
    %c0_31 = arith.constant 0 : index
    %33 = vector.load %arg1[%c5, %c0_30, %c0_31] : memref<9x8x8xbf16, #tpu.memory_space<vmem>>, vector<1x8x8xbf16>
    %34 = vector.shape_cast %33 : vector<1x8x8xbf16> to vector<8x8xbf16>
    %cst_32 = arith.constant dense<0.000000e+00> : vector<8x256xf32>
    %35 = tpu.matmul %34, %32, %cst_32 {dimension_numbers = #tpu.dot_dimension_numbers<[1], [0], [0], [1], [0, 0, 1, 1], [], []>} : vector<8x8xbf16>, vector<8x256xbf16>, vector<8x256xf32> -> vector<8x256xf32>
    %36 = arith.addf %30, %35 : vector<8x256xf32>
    %c0_33 = arith.constant 0 : index
    %c0_34 = arith.constant 0 : index
    %c32 = arith.constant 32 : index
    %37 = vector.load %arg2[%c0_33, %c0_34, %c32] : memref<1x8x384xbf16, #tpu.memory_space<vmem>>, vector<1x8x256xbf16>
    %38 = vector.shape_cast %37 : vector<1x8x256xbf16> to vector<8x256xbf16>
    %c6 = arith.constant 6 : index
    %c0_35 = arith.constant 0 : index
    %c0_36 = arith.constant 0 : index
    %39 = vector.load %arg1[%c6, %c0_35, %c0_36] : memref<9x8x8xbf16, #tpu.memory_space<vmem>>, vector<1x8x8xbf16>
    %40 = vector.shape_cast %39 : vector<1x8x8xbf16> to vector<8x8xbf16>
    %cst_37 = arith.constant dense<0.000000e+00> : vector<8x256xf32>
    %41 = tpu.matmul %40, %38, %cst_37 {dimension_numbers = #tpu.dot_dimension_numbers<[1], [0], [0], [1], [0, 0, 1, 1], [], []>} : vector<8x8xbf16>, vector<8x256xbf16>, vector<8x256xf32> -> vector<8x256xf32>
    %42 = arith.addf %36, %41 : vector<8x256xf32>
    %c0_38 = arith.constant 0 : index
    %c0_39 = arith.constant 0 : index
    %c33 = arith.constant 33 : index
    %43 = vector.load %arg2[%c0_38, %c0_39, %c33] : memref<1x8x384xbf16, #tpu.memory_space<vmem>>, vector<1x8x256xbf16>
    %44 = vector.shape_cast %43 : vector<1x8x256xbf16> to vector<8x256xbf16>
    %c7 = arith.constant 7 : index
    %c0_40 = arith.constant 0 : index
    %c0_41 = arith.constant 0 : index
    %45 = vector.load %arg1[%c7, %c0_40, %c0_41] : memref<9x8x8xbf16, #tpu.memory_space<vmem>>, vector<1x8x8xbf16>
    %46 = vector.shape_cast %45 : vector<1x8x8xbf16> to vector<8x8xbf16>
    %cst_42 = arith.constant dense<0.000000e+00> : vector<8x256xf32>
    %47 = tpu.matmul %46, %44, %cst_42 {dimension_numbers = #tpu.dot_dimension_numbers<[1], [0], [0], [1], [0, 0, 1, 1], [], []>} : vector<8x8xbf16>, vector<8x256xbf16>, vector<8x256xf32> -> vector<8x256xf32>
    %48 = arith.addf %42, %47 : vector<8x256xf32>
    %c0_43 = arith.constant 0 : index
    %c0_44 = arith.constant 0 : index
    %c34 = arith.constant 34 : index
    %49 = vector.load %arg2[%c0_43, %c0_44, %c34] : memref<1x8x384xbf16, #tpu.memory_space<vmem>>, vector<1x8x256xbf16>
    %50 = vector.shape_cast %49 : vector<1x8x256xbf16> to vector<8x256xbf16>
    %c8 = arith.constant 8 : index
    %c0_45 = arith.constant 0 : index
    %c0_46 = arith.constant 0 : index
    %51 = vector.load %arg1[%c8, %c0_45, %c0_46] : memref<9x8x8xbf16, #tpu.memory_space<vmem>>, vector<1x8x8xbf16>
    %52 = vector.shape_cast %51 : vector<1x8x8xbf16> to vector<8x8xbf16>
    %cst_47 = arith.constant dense<0.000000e+00> : vector<8x256xf32>
    %53 = tpu.matmul %52, %50, %cst_47 {dimension_numbers = #tpu.dot_dimension_numbers<[1], [0], [0], [1], [0, 0, 1, 1], [], []>} : vector<8x8xbf16>, vector<8x256xbf16>, vector<8x256xf32> -> vector<8x256xf32>
    %54 = arith.addf %48, %53 : vector<8x256xf32>
    %c0_48 = arith.constant 0 : index
    %c0_49 = arith.constant 0 : index
    %c0_50 = arith.constant 0 : index
    %55 = vector.load %arg3[%c0_48, %c0_49, %c0_50] : memref<1x8x256xf32, #tpu.memory_space<vmem>>, vector<1x8x256xf32>
    %56 = vector.shape_cast %55 : vector<1x8x256xf32> to vector<8x256xf32>
    %57 = vector.shape_cast %54 : vector<8x256xf32> to vector<1x8x256xf32>
    tpu.vector_store %arg3[%c0_48, %c0_49, %c0_50], %57 {strides = array<i32>} : memref<1x8x256xf32, #tpu.memory_space<vmem>>, vector<1x8x256xf32>,
    return
  }
  func.func @transform_0(%arg0: i32) -> (i32, i32, i32) {
    %c0_i32 = arith.constant 0 : i32
    %c0_i32_0 = arith.constant 0 : i32
    %c0_i32_1 = arith.constant 0 : i32
    %c0_i32_2 = arith.constant 0 : i32
    return %c0_i32, %c0_i32_0, %c0_i32_1 : i32, i32, i32
  }
  func.func @transform_1(%arg0: i32) -> (i32, i32, i32) {
    %c0_i32 = arith.constant 0 : i32
    %c0_i32_0 = arith.constant 0 : i32
    %c0_i32_1 = arith.constant 0 : i32
    return %arg0, %c0_i32, %c0_i32_0 : i32, i32, i32
  }
  func.func @transform_2(%arg0: i32) -> (i32, i32, i32) {
    %c0_i32 = arith.constant 0 : i32
    %c0_i32_0 = arith.constant 0 : i32
    %c0_i32_1 = arith.constant 0 : i32
    return %arg0, %c0_i32, %c0_i32_0 : i32, i32, i32
  }
}

</mosaic_0001>

<bundles_post_ra>
// kernel: tpu_custom_call.1
= control target key start
LH: loop header
LB: loop body
LE: loop exit
PB: predicated region body
PF: predicated region fallthrough
CT: control target
= control target key end

     0   :  { %7 = vsyncpa [#allocation3], 0  ;;  %s1167_s0 = inlined_call_operand.vmem [shape: bf16[9,8,8], index: 0, kind: input, shape index: {}]   ;;  %s1168_s1 = inlined_call_operand.vmem [shape: bf16[2,8,384], index: 1, kind: input, shape index: {}]   ;;  %s1169_s2 = inlined_call_operand.hbm [shape: f32[2,8,256], index: 2, kind: output, shape index: {}]  }
   0x1   :  { %9 = vsyncpa [#allocation3 + $0x1], 0  ;;  %s1004_s9 = smov 0   ;;  %s1006_s10 = smov 0  }
   0x2   :  { %s1008_s11 = smov 0   ;;  %s1010_s12 = smov 0  }
   0x3 LB: > { %s1025_s13 = sadd.s32 4294967295, %s977_s12   ;;  %s790_s14 = sadd.s32 4294967294, %s977_s12   ;;  %s977_s12 = sphi %s1010_s12, %s1175_s12   ;;  %s973_s11 = sphi %s1008_s11, %s1174_s11   ;;  %s969_s10 = sphi %s1006_s10, %s1173_s10   ;;  %s965_s9 = sphi %s1004_s9, %s1172_s9  }
   0x4   : > { %s1029_s15 = sadd.s32 1, %s977_s12   ;;  %s69_s16 = sadd.s32 1, %s973_s11 }
   0x5   : > { %s66_s17 = ssub.s32 %s977_s12, %s1029_s15  ;;  %p79_p0 = scmp.ne.s32.totalorder %s973_s11, %s969_s10 }
   0x6   : > { %p67_p1 = scmp.eq.s32.totalorder %s66_s17, 0  ;;  %p80_p2 = scmp.eq.s32.totalorder %s1025_s13, 1 }
   0x7   : > { %p85_p3 = scmp.ne.s32.totalorder %s969_s10, %s965_s9  ;;  %p86_p4 = scmp.eq.s32.totalorder %s790_s14, 1 }
   0x8   : > { %s1040_s18 = scalar_select %p67_p1, %s973_s11, %s69_s16  }
   0x9   : > { %p1042_p5 = por %p80_p2, %p79_p0  ;;  %p1046_p6 = por %p86_p4, %p85_p3 }
   0xa   : > { %p793_p7 = scmp.ge.s32.totalorder %s977_s12, 1  ;;  %p115_p8 = scmp.lt.s32.totalorder %s977_s12, 3 }
   0xc   : > { %p116_p9 = pnand %p793_p7, %p115_p8 }
   0xd   : > { %p137_p10 = scmp.lt.s32.totalorder (!%p116_p9), %s1025_s13, 1  ;;  %v979_v0 = vmov (!%p116_p9), 0   ;;  %s980_s26 = smov (!%p116_p9), 111   ;;  %vm407_vm0 = vcmask (!%p116_p9), 908288   ;;  %vm170_vm1 = vcmask (!%p116_p9), 1043456   ;;  %vm163_vm2 = vcmask (!%p116_p9), 1039360  }
   0xe   : > { %119 = sbr.rel (%p116_p9) target bundleno = 430 (0x1ae), region = 28  ;;  %451 = vmatprep.mubr.bf16.mxu0 (!%p116_p9), %v979_v0  ;;  %209 = vmatprep.mubr.bf16.mxu1 (!%p116_p9), %v979_v0  ;;  %s981_s27 = smov (!%p116_p9), 127   ;;  %vm166_vm3 = vcmask (!%p116_p9), 64512   ;;  %v812_v13 = vld [vmem:[%s1167_s0 + $0x10] sm:$0xf] (!%p116_p9)  ;;  %vm470_vm4 = vcmask (!%p116_p9), 900096  }
   0xf   : > { %s982_s28 = smov (!%p116_p9), 110   ;;  %s983_s29 = smov (!%p116_p9), 96   ;;  %v796_v19 = vld [vmem:[%s1167_s0 + $0x4] sm:$0xf] (!%p116_p9)  ;;  %vm533_vm5 = vcmask (!%p116_p9), 785408   ;;  %vm281_vm6 = vcmask (!%p116_p9), 1031168  }
  0x10   : > { %s984_s30 = smov (!%p116_p9), 126   ;;  %s985_s3 = smov (!%p116_p9), 95   ;;  %v815_v27 = vld [vmem:[%s1167_s0 + $0x14] sm:$0xf] (!%p116_p9)  ;;  %v144_v33 = vld [vmem:[%s1167_s0] sm:$0xf] (!%p116_p9) }
  0x11   : > { %s986_s4 = smov (!%p116_p9), 112   ;;  %s987_s5 = smov (!%p116_p9), 94   ;;  %vm596_vm7 = vcmask (!%p116_p9), 777216   ;;  %v818_v41 = vld [vmem:[%s1167_s0 + $0x18] sm:$0xf] (!%p116_p9)  ;;  %vm344_vm8 = vcmask (!%p116_p9), 916480  }
  0x12   : > { %v806_v47 = vld [vmem:[%s1167_s0 + $0x8] sm:$0xf] (!%p116_p9)  ;;  %vm659_vm9 = vcmask (!%p116_p9), 769024   ;;  %v821_v55 = vld [vmem:[%s1167_s0 + $0x1c] sm:$0xf] (!%p116_p9)  ;;  %s832_s7 = sshll.u32 (!%p116_p9), %s1025_s13, 8 }
  0x13   : > { %v809_v61 = vld [vmem:[%s1167_s0 + $0xc] sm:$0xf] (!%p116_p9)  ;;  %v824_v62 = vld [vmem:[%s1167_s0 + $0x20] sm:$0xf] (!%p116_p9)  ;;  %s988_s23 = smov (!%p116_p9), [#allocation2]  }
  0x14   : > { %s919_s24 = sshll.u32 (!%p116_p9), %s988_s23, 4  ;;  %s920_s24 = int_to_ptr.vmem [resolvable:$false] %s919_s24 }
  0x15   : > { %s138_s21 = scalar_select %p137_p10, %s1025_s13, 1 }
  0x17   : > { %s863_s22 = smul.u32 12, %s138_s21  ;;  %s1125_s21 = scalar_lea.hbm %s1169_s2, %s832_s7 }
  0x19   : > { %s141_s25 = scalar_lea.vmem %s1168_s1, %s863_s22 }
  0x1a   : > { %v912_v1 = vld [vmem:[%s141_s25 + $0x8] ss:$0 sps:$4 sm:$0xff]   ;;  %v145_v2 = vld [vmem:[%s141_s25] sm:$0xff]  ;;  %s921_s25 = scalar_lea.vmem %s920_s24, 512 }
  0x1b   : > { %v797_v3 = vcombine.low %v145_v2, %v145_v2  ;;  %405 = vrot.lane.b32.xlu1 %v912_v1, %s980_s26  ;;  %v798_v4 = vcombine.high %v145_v2, %v145_v2 }
  0x1d   : > { %401 = vrot.lane.b32.xlu0 %v797_v3, %s980_s26  ;;  %v227_v21 = vsel %vm170_vm1, %v797_v3, 0 }
  0x1f   : > { %157 = vrot.lane.b32.xlu1 %v797_v3, %s981_s27 }
  0x21   : > { %403 = vrot.lane.b32.xlu0 %v798_v4, %s980_s26 }
  0x23   : > { %161 = vrot.lane.b32.xlu1 %v912_v1, %s981_s27 }
  0x25   : > { %159 = vrot.lane.b32.xlu0 %v798_v4, %s981_s27 }
  0x27   : > { %466 = vrot.lane.b32.xlu1 %v798_v4, %s982_s28 }
  0x29   : > { %464 = vrot.lane.b32.xlu0 %v797_v3, %s982_s28 }
  0x2b   : > { %527 = vrot.lane.b32.xlu1 %v797_v3, %s983_s29 }
  0x2d   : > { %468 = vrot.lane.b32.xlu0 %v912_v1, %s982_s28 }
  0x2f   : > { %531 = vrot.lane.b32.xlu1 %v912_v1, %s983_s29 }
  0x31   : > { %529 = vrot.lane.b32.xlu0 %v798_v4, %s983_s29 }
  0x33   : > { %277 = vrot.lane.b32.xlu1 %v798_v4, %s984_s30 }
  0x35   : > { %275 = vrot.lane.b32.xlu0 %v797_v3, %s984_s30 }
  0x37   : > { %590 = vrot.lane.b32.xlu1 %v797_v3, %s985_s3 }
  0x39   : > { %279 = vrot.lane.b32.xlu0 %v912_v1, %s984_s30 }
  0x3b   : > { %594 = vrot.lane.b32.xlu1 %v912_v1, %s985_s3 }
  0x3d   : > { %592 = vrot.lane.b32.xlu0 %v798_v4, %s985_s3 }
  0x3f   : > { %340 = vrot.lane.b32.xlu1 %v798_v4, %s986_s4 }
  0x41   : > { %338 = vrot.lane.b32.xlu0 %v797_v3, %s986_s4 }
  0x43   : > { %653 = vrot.lane.b32.xlu1 %v797_v3, %s987_s5 }
  0x45   : > { %342 = vrot.lane.b32.xlu0 %v912_v1, %s986_s4 }
  0x47   : > { %657 = vrot.lane.b32.xlu1 %v912_v1, %s987_s5 }
  0x49   : > { %655 = vrot.lane.b32.xlu0 %v798_v4, %s987_s5  ;;  %s134_s5 = sand.u32 1, %s969_s10  }
  0x4a   : > { %s794_s6 = sshll.u32 %s134_s5, 4  ;;  %s717_s13 = scalar_lea.sflag [#allocation3], %s134_s5 }
  0x4b   : > { %s136_s8 = scalar_lea.vmem [#allocation2], %s794_s6 }
  0x4c   : > { %s731_s14 = sshll.u32 %s136_s8, 4  ;;  %s1127_s14 = int_to_ptr.vmem [resolvable:$true] %s731_s14 }
  0x4d   : > { %s915_s22 = scalar_lea.vmem %s1127_s14, 256  ;;  %p922_p0 = scmp.lt.s32.totalorder %s1127_s14, %s920_s24 }
  0x4e   : > { %p916_p11 = scmp.ne.s32.totalorder %s1127_s14, %s915_s22  ;;  %p923_p1 = scmp.lt.s32.totalorder %s921_s25, %s915_s22 }
  0x50   : > { %p917_p12 = pnand %p916_p11, %p1042_p5  ;;  %p924_p2 = por %p923_p1, %p922_p0 }
  0x52   : > { %p918_p13 = pneg %p917_p12 }
  0x54   : > { %p925_p3 = pnand %p924_p2, %p918_p13 }
  0x8d   : > { %v406_v5 = vpop.permute.xlu1 %405 }
  0x8f   : > { %v402_v6 = vpop.permute.xlu0 %401 }
  0x91   : > { %v158_v7 = vpop.permute.xlu1 %157 }
  0x93   : > { %v404_v8 = vpop.permute.xlu0 %403 }
  0x94   : > { %v409_v9 = vsel %vm407_vm0, %v404_v8, %v406_v5  ;;  %v408_v10 = vsel %vm407_vm0, %v402_v6, %v404_v8 }
  0x95   : > { %813 = vmatprep.subr.msk.bf16.mxu0 %vm170_vm1, %v409_v9  ;;  %v414_v11 = vsel %vm170_vm1, %v408_v10, 0  ;;  %v162_v12 = vpop.permute.xlu1 %161 }
  0x96   : > { %420 = vmatpush1.bf16.msra.mxu0 %v414_v11 }
  0x97   : > { %v160_v14 = vpop.permute.xlu0 %159 }
  0x98   : > { %v165_v15 = vsel %vm163_vm2, %v160_v14, %v162_v12  ;;  %v164_v16 = vsel %vm163_vm2, %v158_v7, %v160_v14 }
  0x99   : > { %800 = vmatprep.subr.msk.bf16.mxu1 %vm170_vm1, %v165_v15  ;;  %814 = vmatmul.mubr.msk.bf16.vlgmr.msra.gmra.mrb[0].mxu0 %vm166_vm3, %v812_v13  ;;  %v172_v17 = vsel %vm170_vm1, %v164_v16, 0  ;;  %v467_v18 = vpop.permute.xlu1 %466 }
  0x9a   : > { %178 = vmatpush1.bf16.msra.mxu1 %v172_v17  ;;  %514 = vmatprep.mubr.bf16.mxu0 %v979_v0 }
  0x9b   : > { %v465_v20 = vpop.permute.xlu0 %464  ;;  %804 = vmatprep.subr.msk.bf16.mxu1 %vm170_vm1, %v798_v4 }
  0x9c   : > { %v471_v22 = vsel %vm470_vm4, %v465_v20, %v467_v18 }
  0x9d   : > { %801 = vmatmul.mubr.msk.bf16.vlgmr.msra.gmra.mrb[0].mxu1 %vm166_vm3, %v796_v19  ;;  %v528_v23 = vpop.permute.xlu1 %527  ;;  %v477_v26 = vsel %vm170_vm1, %v471_v22, 0 }
  0x9e   : > { %233 = vmatpush1.bf16.msra.mxu1 %v227_v21  ;;  %264 = vmatprep.mubr.bf16.mxu1 %v979_v0 }
  0x9f   : > { %v469_v24 = vpop.permute.xlu0 %468 }
  0xa0   : > { %v472_v25 = vsel %vm470_vm4, %v467_v18, %v469_v24 }
  0xa1   : > { %816 = vmatprep.subr.msk.bf16.mxu0 %vm170_vm1, %v472_v25  ;;  %v532_v28 = vpop.permute.xlu1 %531 }
  0xa2   : > { %483 = vmatpush1.bf16.msra.mxu0 %v477_v26 }
  0xa3   : > { %v530_v29 = vpop.permute.xlu0 %529 }
  0xa4   : > { %v534_v30 = vsel %vm533_vm5, %v528_v23, %v530_v29  ;;  %v535_v31 = vsel %vm533_vm5, %v530_v29, %v532_v28 }
  0xa5   : > { %817 = vmatmul.mubr.msk.bf16.vlgmr.msra.gmra.mrb[0].mxu0 %vm166_vm3, %v815_v27  ;;  %v540_v32 = vsel %vm170_vm1, %v534_v30, 0  ;;  %819 = vmatprep.subr.msk.bf16.mxu0 %vm170_vm1, %v535_v31  ;;  %v278_v34 = vpop.permute.xlu1 %277 }
  0xa6   : > { %546 = vmatpush1.bf16.msra.mxu0 %v540_v32  ;;  %577 = vmatprep.mubr.bf16.mxu0 %v979_v0 }
  0xa7   : > { %v276_v35 = vpop.permute.xlu0 %275 }
  0xa8   : > { %v282_v36 = vsel %vm281_vm6, %v276_v35, %v278_v34 }
  0xa9   : > { %805 = vmatmul.mubr.msk.bf16.vlgmr.msra.gmra.mrb[0].mxu1 %vm166_vm3, %v144_v33  ;;  %v591_v37 = vpop.permute.xlu1 %590  ;;  %v288_v38 = vsel %vm170_vm1, %v282_v36, 0 }
  0xaa   : > { %325 = vmatprep.mubr.bf16.mxu1 %v979_v0 }
  0xab   : > { %v280_v39 = vpop.permute.xlu0 %279 }
  0xac   : > { %v283_v40 = vsel %vm281_vm6, %v278_v34, %v280_v39 }
  0xad   : > { %807 = vmatprep.subr.msk.bf16.mxu1 %vm170_vm1, %v283_v40  ;;  %v595_v42 = vpop.permute.xlu1 %594 }
  0xae   : > { %294 = vmatpush1.bf16.msra.mxu1 %v288_v38 }
  0xaf   : > { %v593_v43 = vpop.permute.xlu0 %592 }
  0xb0   : > { %v597_v44 = vsel %vm596_vm7, %v591_v37, %v593_v43  ;;  %v598_v45 = vsel %vm596_vm7, %v593_v43, %v595_v42 }
  0xb1   : > { %820 = vmatmul.mubr.msk.bf16.vlgmr.msra.gmra.mrb[0].mxu0 %vm166_vm3, %v818_v41  ;;  %v603_v46 = vsel %vm170_vm1, %v597_v44, 0  ;;  %822 = vmatprep.subr.msk.bf16.mxu0 %vm170_vm1, %v598_v45  ;;  %v341_v48 = vpop.permute.xlu1 %340 }
  0xb2   : > { %609 = vmatpush1.bf16.msra.mxu0 %v603_v46  ;;  %640 = vmatprep.mubr.bf16.mxu0 %v979_v0 }
  0xb3   : > { %v339_v49 = vpop.permute.xlu0 %338 }
  0xb4   : > { %v345_v50 = vsel %vm344_vm8, %v339_v49, %v341_v48 }
  0xb5   : > { %808 = vmatmul.mubr.msk.bf16.vlgmr.msra.gmra.mrb[0].mxu1 %vm166_vm3, %v806_v47  ;;  %v654_v51 = vpop.permute.xlu1 %653  ;;  %v351_v52 = vsel %vm170_vm1, %v345_v50, 0 }
  0xb6   : > { %388 = vmatprep.mubr.bf16.mxu1 %v979_v0 }
  0xb7   : > { %v343_v53 = vpop.permute.xlu0 %342 }
  0xb8   : > { %v346_v54 = vsel %vm344_vm8, %v341_v48, %v343_v53 }
  0xb9   : > { %810 = vmatprep.subr.msk.bf16.mxu1 %vm170_vm1, %v346_v54  ;;  %v658_v56 = vpop.permute.xlu1 %657 }
  0xba   : > { %357 = vmatpush1.bf16.msra.mxu1 %v351_v52 }
  0xbb   : > { %v656_v57 = vpop.permute.xlu0 %655 }
  0xbc   : > { %v660_v58 = vsel %vm659_vm9, %v654_v51, %v656_v57  ;;  %v661_v59 = vsel %vm659_vm9, %v656_v57, %v658_v56 }
  0xbd   : > { %823 = vmatmul.mubr.msk.bf16.vlgmr.msra.gmra.mrb[0].mxu0 %vm166_vm3, %v821_v55  ;;  %v666_v60 = vsel %vm170_vm1, %v660_v58, 0  ;;  %825 = vmatprep.subr.msk.bf16.mxu0 %vm170_vm1, %v661_v59 }
  0xbe   : > { %672 = vmatpush1.bf16.msra.mxu0 %v666_v60  ;;  %703 = vmatprep.mubr.bf16.mxu0 %v979_v0 }
  0xc1   : > { %811 = vmatmul.mubr.msk.bf16.vlgmr.msra.gmra.mrb[0].mxu1 %vm166_vm3, %v809_v61 }
  0xc9   : > { %826 = vmatmul.mubr.msk.bf16.vlgmr.msra.gmra.mrb[0].mxu0 %vm166_vm3, %v824_v62 }
 0x194   : > { %v390_v63 = vpop.f32.mrb[0].mxu1 }
 0x195   : > { %v392_v1 = vpop.f32.mrb[1].mxu1 }
 0x196   : > { %v394_v2 = vpop.f32.mrb[2].mxu1 }
 0x197   : > { %v395_v3 = vpop.f32.mrb[3].mxu1 }
 0x19c   : > { %v705_v4 = vpop.f32.mrb[0].mxu0 }
 0x19d   : > { %v833_v0 = vadd.f32 %v705_v4, %v390_v63  ;;  %v707_v5 = vpop.f32.mrb[1].mxu0 }
 0x19e   : > { %v834_v6 = vadd.f32 %v707_v5, %v392_v1  ;;  %v709_v7 = vpop.f32.mrb[2].mxu0 }
 0x19f   : > { %714 = vst [vmem:[%s136_s8] sm:$0xff] %v833_v0  ;;  %v710_v8 = vpop.f32.mrb[3].mxu0 }
 0x1a0   : > { %715 = vst [vmem:[%s136_s8 + $0x8] sm:$0xff] %v834_v6 }
 0x1a1   : > { %928 = shalt.err (!%p925_p3)
}
 0x1a2   : > { %s929_s26 = scalar_lea.hbm %s1125_s21, 256  ;;  %s933_s29 = scalar_lea.hbm %s1169_s2, 512 }
 0x1a3   : > { %p930_p4 = scmp.ne.s32.totalorder %s1125_s21, %s929_s26  ;;  %p934_p9 = scmp.lt.u32.totalorder %s1125_s21, %s1169_s2 }
 0x1a4   : > { %p935_p10 = scmp.lt.u32.totalorder %s933_s29, %s929_s26  ;;  %p937_p12 = scmp.lt.u32.totalorder %s929_s26, %s1125_s21 }
 0x1a5   : > { %p931_p7 = pnand %p930_p4, %p1042_p5 }
 0x1a6   : > { %p936_p11 = por %p935_p10, %p934_p9 }
 0x1a7   : > { %p932_p8 = pneg %p931_p7 }
 0x1a8   : > { %p938_p13 = por %p937_p12, %p936_p11 }
 0x1aa   : > { %p939_p0 = pnand %p938_p13, %p932_p8 }
 0x1ac   : > { %942 = shalt.err (!%p939_p0)
}
 0x1ad   : > { %864 = dma.vmem_to_hbm [thread:$0]  (%p1042_p5), %s1127_s14, 256, %s1125_s21, %s717_s13  }
 0x1ae PF: > { %p870_p1 = scmp.ge.s32.totalorder %s977_s12, 2  ;;  %s743_s4 = sand.u32 1, %s965_s9  }
 0x1af   : > { %s744_s5 = scalar_lea.sflag [#allocation3], %s743_s4 }
 0x1b0   : > { %p867_p2 = pnand %p870_p1, %p1046_p6 }
 0x1b2   : > { %960 = dma.done.wait (!%p867_p2), %s744_s5, 256  }
 0x1b3   : > { %962 = vsyncadd (!%p867_p2), %s744_s5, 4294967040  ;;  %p12_p3 = scmp.ge.s32.totalorder %s1029_s15, 4   ;;  %s1172_s9 = smov %s969_s10 }
 0x1b4   : > { %s1173_s10 = smov %s973_s11  ;;  %s1174_s11 = smov %s1040_s18 }
 0x1b5   : > { %s1175_s12 = smov %s1029_s15  ;;  %14 = sbr.rel (!%p12_p3) target bundleno = 3 (0x3), region = 71 }
 0x1bc   :  { %749 = vsyncpa [#allocation3], 1 }
 0x1bd   :  { %751 = vsyncpa [#allocation3 + $0x1], 1 }

</bundles_post_ra>
